<compile_context>
chip_gen: v7x
topology: tpu7x:2x2x1
jax: 0.10.0
libtpu: 0.0.40
codegen_flags: <defaults>
</compile_context>

<pallas_src>
import jax
import jax.numpy as jnp
from jax.experimental import pallas as pl
from jax.experimental.pallas import tpu as pltpu

# ----------------------------- configuration -------------------------------
NUM_BASE = 3        # number of base models in the ensemble
NUM_CLASSES = 5     # classes predicted by each base model and the meta model

LANE = 128          # TPU vreg lane width
SUBLANE = 8         # TPU vreg sublane count (f32)


def _round_up(x, m):
    return (x + m - 1) // m * m


def _pick_batch_tile(batch, bytes_per_row, max_tile=512, per_buffer_budget=4 << 20):
    """Sublane-aligned batch tile that keeps each double-buffered x tile small."""
    tb = min(max_tile, max(SUBLANE, per_buffer_budget // max(bytes_per_row, 1)))
    tb = max(SUBLANE, (tb // SUBLANE) * SUBLANE)
    return min(tb, _round_up(batch, SUBLANE))


# ------------------------------- kernel ------------------------------------
def stacking_kernel(x_ref, bw_ref, bb_ref, mw_ref, mb_ref, out_ref):
    """One batch tile of the stacking-ensemble forward.

    x_ref  : (TB, C, H*W)   input tile, NCHW with spatial flattened
    bw_ref : (C, SP)        fused base-model weights (pre-scaled by 1/HW),
                            columns = torch.cat([W_0, W_1, ...], dim=1), zero-padded
    bb_ref : (1, SP)        fused base-model biases, zero-padded
    mw_ref : (SP, OP)       meta-model weight, zero-padded
    mb_ref : (1, OP)        meta-model bias, zero-padded
    out_ref: (TB, OP)       meta-model output tile (lane-padded)
    """
    # Global average pool: lane-axis sum (XLU); the 1/HW scale lives in bw_ref.
    pooled = jnp.sum(x_ref[...], axis=-1)                       # (TB, C)

    # All base models at once == torch.cat([m(x) for m in base_models], dim=1).
    stacked = (
        jnp.dot(pooled, bw_ref[...], preferred_element_type=jnp.float32)
        + bb_ref[...]
    )                                                           # (TB, SP)

    # Meta model on the stacked predictions.
    out = (
        jnp.dot(stacked, mw_ref[...], preferred_element_type=jnp.float32)
        + mb_ref[...]
    )                                                           # (TB, OP)
    out_ref[...] = out.astype(out_ref.dtype)


# ------------------------------- wrapper ------------------------------------
def stacking_ensemble_forward(x_nchw, base_w, base_b, meta_w, meta_b):
    """x_nchw: (B, C, H, W) float32 -> (B, NUM_CLASSES) float32."""
    B, C, H, W = x_nchw.shape
    HW = H * W
    nb, c_, nc = base_w.shape
    assert c_ == C and nb == NUM_BASE and nc == NUM_CLASSES
    S = nb * nc                              # concatenated-logits width
    OC = meta_w.shape[1]

    # ---- host-side weight re-layout (exactly reproduces cat(dim=1)) --------
    # (NUM_BASE, C, NC) -> (C, NUM_BASE*NC), columns ordered like torch.cat.
    bw2d = jnp.transpose(base_w, (1, 0, 2)).reshape(C, S)
    bw2d = bw2d * (1.0 / HW)                 # fold the average-pool divisor in
    bb2d = base_b.reshape(1, S)

    # ---- lane padding so every matmul/store is (8,128)-dense ----------------
    SP = _round_up(S, LANE)
    OP = _round_up(OC, LANE)
    bw_p = jnp.zeros((C, SP), jnp.float32).at[:, :S].set(bw2d)
    bb_p = jnp.zeros((1, SP), jnp.float32).at[:, :S].set(bb2d)
    mw_p = jnp.zeros((SP, OP), jnp.float32).at[:S, :OC].set(meta_w)
    mb_p = jnp.zeros((1, OP), jnp.float32).at[:, :OC].set(meta_b.reshape(1, OC))

    # ---- batch tiling: sublane-aligned tile, grid over B ---------------------
    TB = _pick_batch_tile(B, bytes_per_row=C * HW * 4)
    BP = _round_up(B, TB)
    x_flat = x_nchw.reshape(B, C, HW)
    if BP != B:
        x_flat = jnp.pad(x_flat, ((0, BP - B), (0, 0), (0, 0)))
    grid = (BP // TB,)

    out_padded = pl.pallas_call(
        stacking_kernel,
        out_shape=jax.ShapeDtypeStruct((BP, OP), jnp.float32),
        grid=grid,
        in_specs=[
            pl.BlockSpec((TB, C, HW), lambda b: (b, 0, 0)),   # x: tiled over batch
            pl.BlockSpec((C, SP), lambda b: (0, 0)),          # fused base weights
            pl.BlockSpec((1, SP), lambda b: (0, 0)),          # fused base biases
            pl.BlockSpec((SP, OP), lambda b: (0, 0)),         # meta weight
            pl.BlockSpec((1, OP), lambda b: (0, 0)),          # meta bias
        ],
        out_specs=pl.BlockSpec((TB, OP), lambda b: (b, 0)),
        compiler_params=pltpu.CompilerParams(
            dimension_semantics=("parallel",),                # shard batch on v7x's 2 TCs
            vmem_limit_bytes=32 * 1024 * 1024,
        ),
    )(x_flat, bw_p, bb_p, mw_p, mb_p)

    return out_padded[:B, :OC]


# --------------------------- pure-JAX reference ------------------------------
def reference_forward(x_nchw, base_w, base_b, meta_w, meta_b):
    pooled = jnp.mean(x_nchw, axis=(2, 3))                       # (B, C)
    preds = [pooled @ base_w[i] + base_b[i] for i in range(base_w.shape[0])]
    stacked = jnp.concatenate(preds, axis=1)
    return stacked @ meta_w + meta_b


# --------------------------------- main --------------------------------------
if __name__ == "__main__":
    B, C, H, W = 2, 4, 16, 16

    key = jax.random.PRNGKey(0)
    k_x, k_bw, k_bb, k_mw, k_mb = jax.random.split(key, 5)

    x = jax.random.normal(k_x, (B, C, H, W), dtype=jnp.float32)

    # Deterministic synthetic parameters (stand-ins for the ResNet-18 base heads).
    base_w = jax.random.normal(k_bw, (NUM_BASE, C, NUM_CLASSES), dtype=jnp.float32) * 0.1
    base_b = jax.random.normal(k_bb, (NUM_BASE, NUM_CLASSES), dtype=jnp.float32) * 0.1
    meta_w = jax.random.normal(k_mw, (NUM_BASE * NUM_CLASSES, NUM_CLASSES), dtype=jnp.float32) * 0.1
    meta_b = jax.random.normal(k_mb, (NUM_CLASSES,), dtype=jnp.float32) * 0.1

    out = stacking_ensemble_forward(x, base_w, base_b, meta_w, meta_b)
    out = jax.block_until_ready(out)

    ref = reference_forward(x, base_w, base_b, meta_w, meta_b)
    assert out.shape == (B, NUM_CLASSES)
    assert jnp.allclose(out, ref, atol=1e-4, rtol=1e-4), "mismatch vs reference"

    print("KERNEL_OK")
</pallas_src>

<mosaic_0001>
module attributes {stable_mosaic.version = 11 : i64} {
  func.func @stacking_kernel(%arg0: i32, %arg1: memref<8x4x256xf32, #tpu.memory_space<vmem>>, %arg2: memref<4x128xf32, #tpu.memory_space<vmem>>, %arg3: memref<1x128xf32, #tpu.memory_space<vmem>>, %arg4: memref<128x128xf32, #tpu.memory_space<vmem>>, %arg5: memref<1x128xf32, #tpu.memory_space<vmem>>, %arg6: memref<8x128xf32, #tpu.memory_space<vmem>>) attributes {dimension_semantics = [#tpu.dimension_semantics<parallel>], iteration_bounds = array<i64: 1>, scalar_prefetch = 0 : i64, scratch_operands = 0 : i64, tpu.core_type = #tpu.core_type<tc>, window_params = [{transform_indices = @transform_0, window_bounds = array<i64: 8, 4, 256>}, {pipeline_mode = #tpu.pipeline_mode<synchronous>, transform_indices = @transform_1, window_bounds = array<i64: 4, 128>}, {pipeline_mode = #tpu.pipeline_mode<synchronous>, transform_indices = @transform_2, window_bounds = array<i64: 1, 128>}, {pipeline_mode = #tpu.pipeline_mode<synchronous>, transform_indices = @transform_3, window_bounds = array<i64: 128, 128>}, {pipeline_mode = #tpu.pipeline_mode<synchronous>, transform_indices = @transform_4, window_bounds = array<i64: 1, 128>}, {transform_indices = @transform_5, window_bounds = array<i64: 8, 128>}]} {
    %c0 = arith.constant 0 : index
    %c0_0 = arith.constant 0 : index
    %c0_1 = arith.constant 0 : index
    %0 = vector.load %arg1[%c0, %c0_0, %c0_1] : memref<8x4x256xf32, #tpu.memory_space<vmem>>, vector<8x4x256xf32>
    %cst = arith.constant dense<0.000000e+00> : vector<8x4xf32>
    %1 = vector.multi_reduction <add>, %0, %cst [2] : vector<8x4x256xf32> to vector<8x4xf32>
    %c0_2 = arith.constant 0 : index
    %c0_3 = arith.constant 0 : index
    %2 = vector.load %arg2[%c0_2, %c0_3] : memref<4x128xf32, #tpu.memory_space<vmem>>, vector<4x128xf32>
    %cst_4 = arith.constant dense<0.000000e+00> : vector<8x128xf32>
    %3 = tpu.matmul %1, %2, %cst_4 {dimension_numbers = #tpu.dot_dimension_numbers<[1], [0], [0], [1], [0, 0, 1, 1], [], []>} : vector<8x4xf32>, vector<4x128xf32>, vector<8x128xf32> -> vector<8x128xf32>
    %c0_5 = arith.constant 0 : index
    %c0_6 = arith.constant 0 : index
    %4 = vector.load %arg3[%c0_5, %c0_6] : memref<1x128xf32, #tpu.memory_space<vmem>>, vector<1x128xf32>
    %5 = vector.broadcast %4 : vector<1x128xf32> to vector<8x128xf32>
    %6 = arith.addf %3, %5 : vector<8x128xf32>
    %c0_7 = arith.constant 0 : index
    %c0_8 = arith.constant 0 : index
    %7 = vector.load %arg4[%c0_7, %c0_8] : memref<128x128xf32, #tpu.memory_space<vmem>>, vector<128x128xf32>
    %cst_9 = arith.constant dense<0.000000e+00> : vector<8x128xf32>
    %8 = tpu.matmul %6, %7, %cst_9 {dimension_numbers = #tpu.dot_dimension_numbers<[1], [0], [0], [1], [0, 0, 1, 1], [], []>} : vector<8x128xf32>, vector<128x128xf32>, vector<8x128xf32> -> vector<8x128xf32>
    %c0_10 = arith.constant 0 : index
    %c0_11 = arith.constant 0 : index
    %9 = vector.load %arg5[%c0_10, %c0_11] : memref<1x128xf32, #tpu.memory_space<vmem>>, vector<1x128xf32>
    %10 = vector.broadcast %9 : vector<1x128xf32> to vector<8x128xf32>
    %11 = arith.addf %8, %10 : vector<8x128xf32>
    %c0_12 = arith.constant 0 : index
    %c0_13 = arith.constant 0 : index
    %12 = vector.load %arg6[%c0_12, %c0_13] : memref<8x128xf32, #tpu.memory_space<vmem>>, vector<8x128xf32>
    tpu.vector_store %arg6[%c0_12, %c0_13], %11 {strides = array<i32>} : memref<8x128xf32, #tpu.memory_space<vmem>>, vector<8x128xf32>,
    return
  }
  func.func @transform_0(%arg0: i32) -> (i32, i32, i32) {
    %c0_i32 = arith.constant 0 : i32
    %c0_i32_0 = arith.constant 0 : i32
    %c0_i32_1 = arith.constant 0 : i32
    return %arg0, %c0_i32, %c0_i32_0 : i32, i32, i32
  }
  func.func @transform_1(%arg0: i32) -> (i32, i32) {
    %c0_i32 = arith.constant 0 : i32
    %c0_i32_0 = arith.constant 0 : i32
    %c0_i32_1 = arith.constant 0 : i32
    return %c0_i32, %c0_i32_0 : i32, i32
  }
  func.func @transform_2(%arg0: i32) -> (i32, i32) {
    %c0_i32 = arith.constant 0 : i32
    %c0_i32_0 = arith.constant 0 : i32
    %c0_i32_1 = arith.constant 0 : i32
    return %c0_i32, %c0_i32_0 : i32, i32
  }
  func.func @transform_3(%arg0: i32) -> (i32, i32) {
    %c0_i32 = arith.constant 0 : i32
    %c0_i32_0 = arith.constant 0 : i32
    %c0_i32_1 = arith.constant 0 : i32
    return %c0_i32, %c0_i32_0 : i32, i32
  }
  func.func @transform_4(%arg0: i32) -> (i32, i32) {
    %c0_i32 = arith.constant 0 : i32
    %c0_i32_0 = arith.constant 0 : i32
    %c0_i32_1 = arith.constant 0 : i32
    return %c0_i32, %c0_i32_0 : i32, i32
  }
  func.func @transform_5(%arg0: i32) -> (i32, i32) {
    %c0_i32 = arith.constant 0 : i32
    %c0_i32_0 = arith.constant 0 : i32
    return %arg0, %c0_i32 : i32, i32
  }
}

</mosaic_0001>

<bundles_post_ra>
// kernel: tpu_custom_call.1
= control target key start
LH: loop header
LB: loop body
LE: loop exit
PB: predicated region body
PF: predicated region fallthrough
CT: control target
= control target key end

     0   :  { %10 = vsyncpa [#allocation3], 0  ;;  %s698_s0 = inlined_call_operand.hbm [shape: f32[8,4,256], index: 0, kind: input, shape index: {}]   ;;  %s699_s1 = inlined_call_operand.hbm [shape: f32[4,128], index: 1, kind: input, shape index: {}]   ;;  %s700_s2 = inlined_call_operand.vmem [shape: f32[1,128], index: 2, kind: input, shape index: {}]   ;;  %s701_s3 = inlined_call_operand.hbm [shape: f32[128,128], index: 3, kind: input, shape index: {}]   ;;  %s702_s4 = inlined_call_operand.vmem [shape: f32[1,128], index: 4, kind: input, shape index: {}]   ;;  %s703_s5 = inlined_call_operand.hbm [shape: f32[8,128], index: 5, kind: output, shape index: {}]  }
   0x1   :  { %11 = vsyncpa [#allocation6], 0 }
   0x2   :  { %12 = vsyncpa [#allocation4], 0  ;;  %s581_s18 = smov [#allocation5]   ;;  %s582_s20 = smov [#allocation2]  }
   0x3   :  { %s31_s19 = sshll.u32 %s581_s18, 4  ;;  %s18_s21 = sshll.u32 %s582_s20, 4  ;;  %s32_s19 = int_to_ptr.vmem [resolvable:$true] %s31_s19  ;;  %s620_s21 = int_to_ptr.vmem [resolvable:$true] %s18_s21 }
   0x4   :  { %s487_s24 = scalar_lea.hbm %s699_s1, 64 }
   0x5   :  { %p488_p0 = scmp.ne.s32.totalorder %s699_s1, %s487_s24  ;;  %p491_p1 = scmp.lt.u32.totalorder %s487_s24, %s699_s1 }
   0x7   :  { %p493_p2 = pnand %p491_p1, %p488_p0 }
   0x9   :  { %496 = shalt.err (!%p493_p2)
}
   0xa   :  { %s497_s29 = scalar_lea.vmem %s32_s19, 64  ;;  %p502_p4 = scmp.lt.s32.totalorder %s32_s19, %s32_s19 }
   0xb   :  { %p498_p3 = scmp.ne.s32.totalorder %s32_s19, %s497_s29  ;;  %p503_p5 = scmp.lt.s32.totalorder %s497_s29, %s497_s29 }
   0xd   :  { %p504_p6 = por %p503_p5, %p502_p4 }
   0xf   :  { %p505_p7 = pnand %p504_p6, %p498_p3 }
  0x11   :  { %508 = shalt.err (!%p505_p7)
}
  0x12   :  { %34 = dma.hbm_to_vmem [thread:$0]  %s699_s1, 64, %s32_s19, [#allocation6]  }
  0x13   :  { %s509_s9 = scalar_lea.hbm %s698_s0, 1024 }
  0x14   :  { %p510_p8 = scmp.ne.s32.totalorder %s698_s0, %s509_s9  ;;  %p513_p9 = scmp.lt.u32.totalorder %s509_s9, %s698_s0 }
  0x16   :  { %p515_p10 = pnand %p513_p9, %p510_p8 }
  0x18   :  { %518 = shalt.err (!%p515_p10)
}
  0x19   :  { %s519_s14 = scalar_lea.vmem %s620_s21, 1024  ;;  %p524_p12 = scmp.lt.s32.totalorder %s620_s21, %s620_s21 }
  0x1a   :  { %p520_p11 = scmp.ne.s32.totalorder %s620_s21, %s519_s14  ;;  %p525_p13 = scmp.lt.s32.totalorder %s519_s14, %s519_s14 }
  0x1c   :  { %p526_p0 = por %p525_p13, %p524_p12 }
  0x1e   :  { %p527_p1 = pnand %p526_p0, %p520_p11 }
  0x20   :  { %530 = shalt.err (!%p527_p1)
}
  0x21   :  { %s583_s1 = smov 128   ;;  %s584_s15 = smov 8  }
  0x22   :  { %24 = dma.hbm_to_vmem [thread:$0]  %s698_s0, 1024, %s620_s21, [#allocation3], %s583_s1, %s583_s1, %s584_s15  }
  0x23   :  { %s585_s18 = smov [#allocation7]   ;;  %s531_s23 = scalar_lea.hbm %s701_s3, 2048 }
  0x24   :  { %s42_s19 = sshll.u32 %s585_s18, 4  ;;  %p532_p2 = scmp.ne.s32.totalorder %s701_s3, %s531_s23  ;;  %s43_s19 = int_to_ptr.vmem [resolvable:$true] %s42_s19 }
  0x25   :  { %p535_p3 = scmp.lt.u32.totalorder %s531_s23, %s701_s3 }
  0x27   :  { %p537_p4 = pnand %p535_p3, %p532_p2 }
  0x29   :  { %540 = shalt.err (!%p537_p4)
}
  0x2a   :  { %s541_s28 = scalar_lea.vmem %s43_s19, 2048  ;;  %p546_p6 = scmp.lt.s32.totalorder %s43_s19, %s43_s19 }
  0x2b   :  { %p542_p5 = scmp.ne.s32.totalorder %s43_s19, %s541_s28  ;;  %p547_p7 = scmp.lt.s32.totalorder %s541_s28, %s541_s28 }
  0x2d   :  { %p548_p8 = por %p547_p7, %p546_p6 }
  0x2f   :  { %p549_p9 = pnand %p548_p8, %p542_p5 }
  0x31   :  { %552 = shalt.err (!%p549_p9)
}
  0x32   :  { %48 = dma.hbm_to_vmem [thread:$0]  %s701_s3, 2048, %s43_s19, [#allocation6], %s583_s1, %s583_s1, %s584_s15  }
  0x33   :  { %575 = dma.done.wait [#allocation3], 1024  }
  0x34   :  { %576 = vsyncadd [#allocation3], 4294966272 }
  0x35   :  { %577 = dma.done.wait [#allocation6], 2112  }
  0x36   :  { %578 = vsyncadd [#allocation6], 4294965184  ;;  %vm92_vm0 = vcmask 1043456   ;;  %v60_v0 = vld [vmem:[#allocation2] sm:$0xff]  ;;  %v62_v1 = vld [vmem:[#allocation2 + $0x10] sm:$0xff]  ;;  %v586_v40 = vmov 0.0  }
  0x37   :  { %v61_v2 = vld [vmem:[#allocation2 + $0x8] sm:$0xff]  ;;  %v76_v3 = vcombine.high %v60_v0, %v60_v0  ;;  %v93_v4 = vsel %vm92_vm0, %v60_v0, 0.0  ;;  %v78_v5 = vcombine.high %v62_v1, %v62_v1  ;;  %v103_v6 = vsel %vm92_vm0, %v62_v1, 0.0  ;;  %v63_v7 = vld [vmem:[#allocation2 + $0x18] sm:$0xff]  ;;  %v64_v8 = vld [vmem:[#allocation2 + $0x20] sm:$0xff]  ;;  %406 = vmatprep.subr.mxu0 %v586_v40  ;;  %s589_s7 = smov [#allocation8]  }
  0x38   :  { %v77_v9 = vcombine.high %v61_v2, %v61_v2  ;;  %v98_v10 = vsel %vm92_vm0, %v61_v2, 0.0  ;;  %v79_v11 = vcombine.high %v63_v7, %v63_v7  ;;  %v65_v12 = vld [vmem:[#allocation2 + $0x28] sm:$0xff]  ;;  %v108_v15 = vsel %vm92_vm0, %v63_v7, 0.0  ;;  %v66_v21 = vld [vmem:[#allocation2 + $0x30] sm:$0xff]  ;;  %v67_v22 = vld [vmem:[#allocation2 + $0x38] sm:$0xff]  ;;  %s373_s8 = sshll.u32 %s589_s7, 4  ;;  %s374_s8 = int_to_ptr.vmem [resolvable:$true] %s373_s8 }
  0x39   :  { %v94_v13 = vsel %vm92_vm0, %v76_v3, 0.0  ;;  %v104_v14 = vsel %vm92_vm0, %v78_v5, 0.0  ;;  %v80_v16 = vcombine.high %v64_v8, %v64_v8  ;;  %v81_v23 = vcombine.high %v65_v12, %v65_v12  ;;  %v133_v41 = vld [vmem:[#allocation5] sm:$0xf]  ;;  %v273_v42 = vld [vmem:[#allocation7] sm:$0xff]  ;;  %v274_v43 = vld [vmem:[#allocation7 + $0x8] sm:$0xff]  ;;  %p558_p11 = scmp.lt.s32.totalorder %s374_s8, %s374_s8 }
  0x3a   :  { %v95_v17 = vadd.f32 %v94_v13, %v93_v4  ;;  %v105_v18 = vadd.f32 %v104_v14, %v103_v6  ;;  %v99_v19 = vsel %vm92_vm0, %v77_v9, 0.0  ;;  %v109_v20 = vsel %vm92_vm0, %v79_v11, 0.0  ;;  %407 = vmatpush3.msk.msra.mxu0 %vm92_vm0, %v133_v41  ;;  %v275_v44 = vld [vmem:[#allocation7 + $0x10] sm:$0xff]  ;;  %v276_v47 = vld [vmem:[#allocation7 + $0x18] sm:$0xff]  ;;  %v277_v49 = vld [vmem:[#allocation7 + $0x20] sm:$0xff]  ;;  %s553_s9 = scalar_lea.vmem %s374_s8, 128 }
  0x3b   :  { %v100_v24 = vadd.f32 %v99_v19, %v98_v10  ;;  %v110_v25 = vadd.f32 %v109_v20, %v108_v15  ;;  %v113_v26 = vsel %vm92_vm0, %v64_v8, 0.0  ;;  %v114_v27 = vsel %vm92_vm0, %v80_v16, 0.0  ;;  %v278_v50 = vld [vmem:[#allocation7 + $0x28] sm:$0xff]  ;;  %v279_v52 = vld [vmem:[#allocation7 + $0x30] sm:$0xff]  ;;  %v280_v53 = vld [vmem:[#allocation7 + $0x38] sm:$0xff]  ;;  %p554_p10 = scmp.ne.s32.totalorder %s374_s8, %s553_s9  ;;  %p559_p12 = scmp.lt.s32.totalorder %s553_s9, %s553_s9 }
  0x3c   :  { %96 = vadd.xlane.f32.xlu0 %v95_v17  ;;  %106 = vadd.xlane.f32.xlu1 %v105_v18  ;;  %v118_v28 = vsel %vm92_vm0, %v65_v12, 0.0  ;;  %v119_v29 = vsel %vm92_vm0, %v81_v23, 0.0  ;;  %v82_v30 = vcombine.high %v66_v21, %v66_v21  ;;  %v83_v31 = vcombine.high %v67_v22, %v67_v22  ;;  %v281_v55 = vld [vmem:[#allocation7 + $0x40] sm:$0xff]  ;;  %v282_v56 = vld [vmem:[#allocation7 + $0x48] sm:$0xff]  ;;  %v283_v58 = vld [vmem:[#allocation7 + $0x50] sm:$0xff] }
  0x3d   :  { %v115_v32 = vadd.f32 %v114_v27, %v113_v26  ;;  %v120_v33 = vadd.f32 %v119_v29, %v118_v28  ;;  %v123_v34 = vsel %vm92_vm0, %v66_v21, 0.0  ;;  %v128_v36 = vsel %vm92_vm0, %v67_v22, 0.0  ;;  %v284_v59 = vld [vmem:[#allocation7 + $0x58] sm:$0xff]  ;;  %v285_v61 = vld [vmem:[#allocation7 + $0x60] sm:$0xff]  ;;  %v286_v62 = vld [vmem:[#allocation7 + $0x68] sm:$0xff]  ;;  %p560_p13 = por %p559_p12, %p558_p11 }
  0x3e   :  { %v124_v35 = vsel %vm92_vm0, %v82_v30, 0.0  ;;  %v129_v37 = vsel %vm92_vm0, %v83_v31, 0.0  ;;  %vm587_vm1 = vmmov 0   ;;  %v588_v45 = vmov 0.0|0.0   ;;  %v287_v27 = vld [vmem:[#allocation7 + $0x70] sm:$0xff]  ;;  %v288_v28 = vld [vmem:[#allocation7 + $0x78] sm:$0xff] }
  0x3f   :  { %v125_v38 = vadd.f32 %v124_v35, %v123_v34  ;;  %v130_v39 = vadd.f32 %v129_v37, %v128_v36  ;;  %408 = vmatprep.mubr.msk.f32.mxu0 %vm587_vm1, %v586_v40  ;;  %443 = vmatprep.mubr.msk.f32.mxu1 %vm587_vm1, %v586_v40  ;;  %v447_v46 = vpack.c.bf16 %v274_v43, %v273_v42  ;;  %v149_v0 = vlaneseq  ;;  %v383_v30 = vld [vmem:[%s700_s2] ss:$0 sm:$0xff]  ;;  %p561_p0 = pnand %p560_p13, %p554_p10 }
  0x40   :  { %101 = vadd.xlane.f32.xlu0 %v100_v24  ;;  %111 = vadd.xlane.f32.xlu1 %v110_v25  ;;  %v450_v48 = vpack.c.bf16 %v276_v47, %v275_v44  ;;  %v453_v51 = vpack.c.bf16 %v278_v50, %v277_v49  ;;  %v456_v54 = vpack.c.bf16 %v280_v53, %v279_v52  ;;  %vm183_vm2 = vcmask 1041409   ;;  %v386_v34 = vld [vmem:[%s702_s4] ss:$0 sm:$0xff] }
  0x41   :  { %446 = vmatprep.subr.bf16.mxu1 %v588_v45  ;;  %v459_v57 = vpack.c.bf16 %v282_v56, %v281_v55  ;;  %v462_v60 = vpack.c.bf16 %v284_v59, %v283_v58  ;;  %v465_v63 = vpack.c.bf16 %v286_v62, %v285_v61  ;;  %v150_v1 = vand.u32 127, %v149_v0 }
  0x42   :  { %448 = vmatpush3.bf16.msra.mxu1 %v447_v46  ;;  %v152_v2 = vshrl.u32 %v149_v0, 7  ;;  %vm185_vm3 = vcmask 1042434   ;;  %vm187_vm4 = vcmask 1043459   ;;  %vm189_vm5 = vcmask 1044484  }
  0x43   :  { %449 = vmatprep.subr.bf16.mxu1 %v588_v45  ;;  %vm191_vm6 = vcmask 1045509   ;;  %vm193_vm7 = vcmask 1046534   ;;  %vm195_vm8 = vcmask 1047559   ;;  %vm197_vm9 = vcmask 31744  }
  0x44   :  { %116 = vadd.xlane.f32.xlu0 %v115_v32  ;;  %121 = vadd.xlane.f32.xlu1 %v120_v33  ;;  %v153_v5 = vsub.s32 %v150_v1, %v152_v2  ;;  %v468_v29 = vpack.c.bf16 %v288_v28, %v287_v27 }
  0x46   :  { %451 = vmatpush3.bf16.msra.mxu1 %v450_v48 }
  0x47   :  { %452 = vmatprep.subr.bf16.mxu1 %v588_v45 }
  0x48   :  { %126 = vadd.xlane.f32.xlu0 %v125_v38  ;;  %131 = vadd.xlane.f32.xlu1 %v130_v39 }
  0x4a   :  { %454 = vmatpush3.bf16.msra.mxu1 %v453_v51 }
  0x4b   :  { %455 = vmatprep.subr.bf16.mxu1 %v588_v45 }
  0x4e   :  { %457 = vmatpush3.bf16.msra.mxu1 %v456_v54 }
  0x4f   :  { %458 = vmatprep.subr.bf16.mxu1 %v588_v45 }
  0x52   :  { %460 = vmatpush3.bf16.msra.mxu1 %v459_v57 }
  0x53   :  { %461 = vmatprep.subr.bf16.mxu1 %v588_v45 }
  0x56   :  { %463 = vmatpush3.bf16.msra.mxu1 %v462_v60 }
  0x57   :  { %464 = vmatprep.subr.bf16.mxu1 %v588_v45 }
  0x5a   :  { %466 = vmatpush3.bf16.msra.mxu1 %v465_v63 }
  0x5b   :  { %467 = vmatprep.subr.bf16.mxu1 %v588_v45 }
  0x5e   :  { %469 = vmatpush3.bf16.msra.mxu1 %v468_v29 }
  0xc9   :  { %v97_v3 = vpop.xlane.xlu0 %96  ;;  %v107_v4 = vpop.xlane.xlu1 %106 }
  0xca   :  { %v154_v8 = vrot.slane %v97_v3, %v153_v5  ;;  %v162_v11 = vrot.slane %v107_v4, %v153_v5 }
  0xcd   :  { %v102_v6 = vpop.xlane.xlu0 %101  ;;  %v112_v7 = vpop.xlane.xlu1 %111 }
  0xce   :  { %v158_v9 = vrot.slane %v102_v6, %v153_v5  ;;  %v166_v10 = vrot.slane %v112_v7, %v153_v5 }
  0xd0   :  { %v184_v12 = vsel %vm183_vm2, %v158_v9, %v154_v8 }
  0xd1   :  { %v186_v13 = vsel %vm185_vm3, %v162_v11, %v184_v12  ;;  %v117_v14 = vpop.xlane.xlu0 %116  ;;  %v122_v15 = vpop.xlane.xlu1 %121 }
  0xd2   :  { %v188_v16 = vsel %vm187_vm4, %v166_v10, %v186_v13  ;;  %v170_v17 = vrot.slane %v117_v14, %v153_v5  ;;  %v174_v18 = vrot.slane %v122_v15, %v153_v5 }
  0xd4   :  { %v190_v19 = vsel %vm189_vm5, %v170_v17, %v188_v16 }
  0xd5   :  { %v127_v20 = vpop.xlane.xlu0 %126  ;;  %v132_v21 = vpop.xlane.xlu1 %131  ;;  %v192_v24 = vsel %vm191_vm6, %v174_v18, %v190_v19 }
  0xd6   :  { %v178_v22 = vrot.slane %v127_v20, %v153_v5  ;;  %v182_v23 = vrot.slane %v132_v21, %v153_v5 }
  0xd8   :  { %v194_v25 = vsel %vm193_vm7, %v178_v22, %v192_v24 }
  0xd9   :  { %v196_v26 = vsel %vm195_vm8, %v182_v23, %v194_v25 }
  0xda   :  { %409 = vmatmul.mubr.msk.f32.vlgmr.msra.gmra.mrb[0].mxu0 %vm197_vm9, %v196_v26 }
 0x1ad   :  { %v269_v31 = vpop.f32.mrb[0].mxu0 }
 0x1ae   :  { %v270_v32 = vadd.f32 %v383_v30, %v269_v31  ;;  %v410_v33 = vpop.f32.mrb[1].mxu0 }
 0x1b0   :  { %444 = vmatmul.mubr.f32.vlgmr.msra.gmra.mrb[0].mxu1 %v270_v32 }
 0x283   :  { %v362_v35 = vpop.f32.mrb[0].mxu1 }
 0x284   :  { %v363_v36 = vadd.f32 %v386_v34, %v362_v35  ;;  %v445_v37 = vpop.f32.mrb[1].mxu1 }
 0x286   :  { %366 = vst [vmem:[#allocation8] sm:$0xff] %v363_v36 }
 0x287   :  { %564 = shalt.err (!%p561_p0)
}
 0x288   :  { %s565_s11 = scalar_lea.hbm %s703_s5, 128 }
 0x289   :  { %p566_p1 = scmp.ne.s32.totalorder %s703_s5, %s565_s11  ;;  %p569_p2 = scmp.lt.u32.totalorder %s565_s11, %s703_s5 }
 0x28b   :  { %p571_p3 = pnand %p569_p2, %p566_p1 }
 0x28d   :  { %574 = shalt.err (!%p571_p3)
}
 0x28e   :  { %376 = dma.vmem_to_hbm [thread:$0]  %s374_s8, 128, %s703_s5, [#allocation4]  }
 0x28f   :  { %579 = dma.done.wait [#allocation4], 128  }
 0x290   :  { %580 = vsyncadd [#allocation4], 4294967168 }
 0x291   :  { %380 = vsyncpa [#allocation3], 1 }
 0x292   :  { %381 = vsyncpa [#allocation6], 1 }
 0x293   :  { %382 = vsyncpa [#allocation4], 1 }

</bundles_post_ra>
